<compile_context>
chip_gen: v5e
topology: v5e:2x2
jax: 0.10.0
libtpu: 0.0.40
codegen_flags: <defaults>
</compile_context>

<pallas_src>
import functools

import jax
import jax.numpy as jnp
from jax.experimental import pallas as pl
from jax.experimental.pallas import tpu as pltpu

LEAKY_SLOPE = 0.01
BN_EPS = 1e-5


def _round_up(x, m):
    return (x + m - 1) // m * m


def _conv_stats_kernel(p_ref, w_ref, y_ref, sum_ref, sq_ref, *, total_rows, tile_rows):
    """Pass 1: conv-as-matmul for one row tile + per-channel sum / sumsq accumulation."""
    i = pl.program_id(0)

    @pl.when(i == 0)
    def _():
        sum_ref[...] = jnp.zeros_like(sum_ref)
        sq_ref[...] = jnp.zeros_like(sq_ref)

    # f32 path keeps HIGHEST so the 1e-3 check against the exact reference holds;
    # bf16 inputs (recommended for bandwidth on v5e/v6e/v7x) use the native MXU rate.
    prec = jax.lax.Precision.HIGHEST if p_ref.dtype == jnp.float32 else None
    y = jnp.dot(p_ref[...], w_ref[...],
                preferred_element_type=jnp.float32, precision=prec)
    y_ref[...] = y.astype(y_ref.dtype)

    # Mask the (possibly garbage) rows of a partial last tile before accumulating
    # batch statistics.  Compile-time no-op when the tile divides P.
    if total_rows % tile_rows != 0:
        row = jax.lax.broadcasted_iota(jnp.int32, (tile_rows, 1), 0) + i * tile_rows
        y = jnp.where(row < total_rows, y, 0.0)
    sum_ref[...] += jnp.sum(y, axis=0, keepdims=True)
    sq_ref[...] += jnp.sum(y * y, axis=0, keepdims=True)


def _bn_act_kernel(y_ref, ab_ref, o_ref):
    """Pass 2: folded BatchNorm affine + LeakyReLU on one row tile."""
    a = ab_ref[0:1, :]
    b = ab_ref[1:2, :]
    z = y_ref[...].astype(jnp.float32) * a + b
    o_ref[...] = jnp.where(z >= 0, z, LEAKY_SLOPE * z).astype(o_ref.dtype)


@functools.partial(jax.jit,
                   static_argnames=("compute_dtype", "vmem_stream_budget_bytes"))
def downsample_forward(x, w, gamma, beta, *,
                       compute_dtype=jnp.float32,
                       vmem_stream_budget_bytes=12 << 20):
    """x: (N, C, H, W) f32, w: (C, C, 3, 3) OIHW, gamma/beta: (C,)."""
    N, C, H, W = x.shape
    Ho = (H + 2 - 3) // 2 + 1
    Wo = (W + 2 - 3) // 2 + 1
    P = N * Ho * Wo
    K = 9 * C

    # ---- lightweight layout glue: NHWC pad + stride-2 taps, NO transpose of the
    # expanded array.  Reduction axis ordered (kh, kw, c_in). ----
    x_nhwc = jnp.transpose(x, (0, 2, 3, 1)).astype(compute_dtype)        # (N, H, W, C)
    x_pad = jnp.pad(x_nhwc, ((0, 0), (1, 1), (1, 1), (0, 0)))
    taps = [x_pad[:, kh:kh + 2 * Ho:2, kw:kw + 2 * Wo:2, :]
            for kh in range(3) for kw in range(3)]                        # 9 x (N,Ho,Wo,C)
    patches = jnp.concatenate(taps, axis=-1).reshape(P, K)                # (P, 9C)
    # TODO(synk): for large shapes, skip materializing im2col entirely by passing the
    # padded NHWC tensor with memory_space=pl.ANY and DMAing 3 row strips per tile.

    # weight OIHW -> rows ordered (kh, kw, c_in), cols = c_out
    w2d = jnp.transpose(w, (2, 3, 1, 0)).reshape(K, C).astype(compute_dtype)

    # ---- row-tile sizing from a VMEM stream budget (generation-aware) ----
    itemsize = jnp.dtype(compute_dtype).itemsize
    per_row = 2 * (K * itemsize + C * 4)        # double-buffered patches + f32 y
    tp = max(8, vmem_stream_budget_bytes // per_row)
    tp = min(tp, _round_up(P, 8), 8192)
    tp = max(8, (tp // 8) * 8)                  # sublane-aligned
    nt = (P + tp - 1) // tp
    resident = K * C * itemsize + 4 * C * 4
    # Keep the request modest so it is valid on v7x's 64 MiB physical VMEM too.
    vmem_limit = int(min(max(2 * (per_row * tp + resident), 16 << 20), 48 << 20))

    # ---- pass 1: conv + batch-stat accumulation ----
    y2d, ysum, ysq = pl.pallas_call(
        functools.partial(_conv_stats_kernel, total_rows=P, tile_rows=tp),
        grid=(nt,),
        in_specs=[
            pl.BlockSpec((tp, K), lambda i: (i, 0)),     # streamed patches
            pl.BlockSpec((K, C), lambda i: (0, 0)),      # weight resident across tiles
        ],
        out_specs=[
            pl.BlockSpec((tp, C), lambda i: (i, 0)),     # conv output y
            pl.BlockSpec((1, C), lambda i: (0, 0)),      # sum   (resident accumulator)
            pl.BlockSpec((1, C), lambda i: (0, 0)),      # sumsq (resident accumulator)
        ],
        out_shape=(
            jax.ShapeDtypeStruct((P, C), jnp.float32),
            jax.ShapeDtypeStruct((1, C), jnp.float32),
            jax.ShapeDtypeStruct((1, C), jnp.float32),
        ),
        compiler_params=pltpu.CompilerParams(
            dimension_semantics=("arbitrary",),          # stats accumulate across tiles
            vmem_limit_bytes=vmem_limit,
        ),
    )(patches, w2d)

    # ---- fold BN (training-mode batch stats, biased variance) into scale/shift ----
    mean = ysum[0] / P                                     # (C,)
    var = jnp.maximum(ysq[0] / P - mean * mean, 0.0)       # (C,), f32 accumulators
    scale = gamma * jax.lax.rsqrt(var + BN_EPS)
    a = scale.astype(jnp.float32)
    b = (beta - mean * scale).astype(jnp.float32)
    ab = jnp.stack([a, b], axis=0)                         # (2, C), single resident block

    # ---- pass 2: normalize + LeakyReLU (independent tiles -> "parallel");
    # output aliases the pass-1 y buffer so no extra (P, C) HBM allocation ----
    out2d = pl.pallas_call(
        _bn_act_kernel,
        grid=(nt,),
        in_specs=[
            pl.BlockSpec((tp, C), lambda i: (i, 0)),
            pl.BlockSpec((2, C), lambda i: (0, 0)),
        ],
        out_specs=pl.BlockSpec((tp, C), lambda i: (i, 0)),
        out_shape=jax.ShapeDtypeStruct((P, C), jnp.float32),
        input_output_aliases={0: 0},
        compiler_params=pltpu.CompilerParams(
            dimension_semantics=("parallel",),
            vmem_limit_bytes=vmem_limit,
        ),
    )(y2d, ab)

    # TODO(synk): for very small C (<32) the C-lane output under-fills the 128-lane
    # vregs/MXU; a VPU tap-accumulation over lane-dense NHWC tiles would be better.
    return out2d.reshape(N, Ho, Wo, C).transpose(0, 3, 1, 2)


def reference_forward(x, w, gamma, beta):
    """Pure-JAX reference of Conv2d(3,2,1,bias=False) + train-mode BN + LeakyReLU."""
    y = jax.lax.conv_general_dilated(
        x, w, window_strides=(2, 2), padding=((1, 1), (1, 1)),
        dimension_numbers=("NCHW", "OIHW", "NCHW"),
        precision=jax.lax.Precision.HIGHEST,
    )
    mean = jnp.mean(y, axis=(0, 2, 3), keepdims=True)
    var = jnp.mean((y - mean) ** 2, axis=(0, 2, 3), keepdims=True)
    z = (y - mean) * jax.lax.rsqrt(var + BN_EPS)
    z = z * gamma.reshape(1, -1, 1, 1) + beta.reshape(1, -1, 1, 1)
    return jnp.where(z >= 0, z, LEAKY_SLOPE * z)


if __name__ == "__main__":
    N, C, H, W = 2, 4, 16, 16
    key = jax.random.PRNGKey(0)
    kx, kw, kg, kb = jax.random.split(key, 4)

    x = jax.random.normal(kx, (N, C, H, W), dtype=jnp.float32)
    w = jax.random.normal(kw, (C, C, 3, 3), dtype=jnp.float32) * 0.1
    gamma = 1.0 + 0.1 * jax.random.normal(kg, (C,), dtype=jnp.float32)
    beta = 0.1 * jax.random.normal(kb, (C,), dtype=jnp.float32)

    out = downsample_forward(x, w, gamma, beta)
    out = jax.block_until_ready(out)

    ref = reference_forward(x, w, gamma, beta)
    assert out.shape == (N, C, H // 2, W // 2), out.shape
    assert jnp.allclose(out, ref, atol=1e-3, rtol=1e-3), float(jnp.max(jnp.abs(out - ref)))

    print("KERNEL_OK")
</pallas_src>

<mosaic_0001>
module attributes {stable_mosaic.version = 11 : i64} {
  func.func @_bn_act_kernel(%arg0: i32, %arg1: memref<128x4xf32, #tpu.memory_space<vmem>>, %arg2: memref<2x4xf32, #tpu.memory_space<vmem>>, %arg3: memref<128x4xf32, #tpu.memory_space<vmem>>) attributes {dimension_semantics = [#tpu.dimension_semantics<parallel>], iteration_bounds = array<i64: 1>, scalar_prefetch = 0 : i64, scratch_operands = 0 : i64, tpu.core_type = #tpu.core_type<tc>, window_params = [{transform_indices = @transform_0, window_bounds = array<i64: 128, 4>}, {pipeline_mode = #tpu.pipeline_mode<synchronous>, transform_indices = @transform_1, window_bounds = array<i64: 2, 4>}, {transform_indices = @transform_2, window_bounds = array<i64: 128, 4>}]} {
    %c0 = arith.constant 0 : index
    %c0_0 = arith.constant 0 : index
    %0 = vector.load %arg2[%c0, %c0_0] : memref<2x4xf32, #tpu.memory_space<vmem>>, vector<1x4xf32>
    %c1 = arith.constant 1 : index
    %c0_1 = arith.constant 0 : index
    %1 = vector.load %arg2[%c1, %c0_1] : memref<2x4xf32, #tpu.memory_space<vmem>>, vector<1x4xf32>
    %c0_2 = arith.constant 0 : index
    %c0_3 = arith.constant 0 : index
    %2 = vector.load %arg1[%c0_2, %c0_3] : memref<128x4xf32, #tpu.memory_space<vmem>>, vector<128x4xf32>
    %3 = vector.broadcast %0 : vector<1x4xf32> to vector<128x4xf32>
    %4 = arith.mulf %2, %3 : vector<128x4xf32>
    %5 = vector.broadcast %1 : vector<1x4xf32> to vector<128x4xf32>
    %6 = arith.addf %4, %5 : vector<128x4xf32>
    %cst = arith.constant 0.000000e+00 : f32
    %7 = vector.broadcast %cst : f32 to vector<128x4xf32>
    %8 = arith.cmpf oge, %6, %7 : vector<128x4xf32>
    %cst_4 = arith.constant 0.00999999977 : f32
    %9 = vector.broadcast %cst_4 : f32 to vector<128x4xf32>
    %10 = arith.mulf %9, %6 : vector<128x4xf32>
    %11 = arith.select %8, %6, %10 : vector<128x4xi1>, vector<128x4xf32>
    %c0_5 = arith.constant 0 : index
    %c0_6 = arith.constant 0 : index
    %12 = vector.load %arg3[%c0_5, %c0_6] : memref<128x4xf32, #tpu.memory_space<vmem>>, vector<128x4xf32>
    tpu.vector_store %arg3[%c0_5, %c0_6], %11 {strides = array<i32>} : memref<128x4xf32, #tpu.memory_space<vmem>>, vector<128x4xf32>,
    return
  }
  func.func @transform_0(%arg0: i32) -> (i32, i32) {
    %c0_i32 = arith.constant 0 : i32
    %c0_i32_0 = arith.constant 0 : i32
    return %arg0, %c0_i32 : i32, i32
  }
  func.func @transform_1(%arg0: i32) -> (i32, i32) {
    %c0_i32 = arith.constant 0 : i32
    %c0_i32_0 = arith.constant 0 : i32
    %c0_i32_1 = arith.constant 0 : i32
    return %c0_i32, %c0_i32_0 : i32, i32
  }
  func.func @transform_2(%arg0: i32) -> (i32, i32) {
    %c0_i32 = arith.constant 0 : i32
    %c0_i32_0 = arith.constant 0 : i32
    return %arg0, %c0_i32 : i32, i32
  }
}

module attributes {stable_mosaic.version = 11 : i64} {
  func.func @_conv_stats_kernel(%arg0: i32, %arg1: memref<128x36xf32, #tpu.memory_space<vmem>>, %arg2: memref<36x4xf32, #tpu.memory_space<vmem>>, %arg3: memref<128x4xf32, #tpu.memory_space<vmem>>, %arg4: memref<1x4xf32, #tpu.memory_space<vmem>>, %arg5: memref<1x4xf32, #tpu.memory_space<vmem>>) attributes {dimension_semantics = [#tpu.dimension_semantics<arbitrary>], iteration_bounds = array<i64: 1>, scalar_prefetch = 0 : i64, scratch_operands = 0 : i64, tpu.core_type = #tpu.core_type<tc>, window_params = [{transform_indices = @transform_0, window_bounds = array<i64: 128, 36>}, {pipeline_mode = #tpu.pipeline_mode<synchronous>, transform_indices = @transform_1, window_bounds = array<i64: 36, 4>}, {transform_indices = @transform_2, window_bounds = array<i64: 128, 4>}, {pipeline_mode = #tpu.pipeline_mode<synchronous>, transform_indices = @transform_3, window_bounds = array<i64: 1, 4>}, {pipeline_mode = #tpu.pipeline_mode<synchronous>, transform_indices = @transform_4, window_bounds = array<i64: 1, 4>}]} {
    %c0_i32 = arith.constant 0 : i32
    %0 = arith.cmpi eq, %arg0, %c0_i32 : i32
    %1 = arith.extui %0 : i1 to i32
    %c0_i32_0 = arith.constant 0 : i32
    %2 = arith.cmpi ne, %1, %c0_i32_0 : i32
    scf.if %2 {
      %cst_16 = arith.constant 0.000000e+00 : f32
      %18 = vector.broadcast %cst_16 : f32 to vector<1x4xf32>
      %c0_17 = arith.constant 0 : index
      %c0_18 = arith.constant 0 : index
      %19 = vector.load %arg4[%c0_17, %c0_18] : memref<1x4xf32, #tpu.memory_space<vmem>>, vector<1x4xf32>
      tpu.vector_store %arg4[%c0_17, %c0_18], %18 {strides = array<i32>} : memref<1x4xf32, #tpu.memory_space<vmem>>, vector<1x4xf32>,
      %cst_19 = arith.constant 0.000000e+00 : f32
      %20 = vector.broadcast %cst_19 : f32 to vector<1x4xf32>
      %c0_20 = arith.constant 0 : index
      %c0_21 = arith.constant 0 : index
      %21 = vector.load %arg5[%c0_20, %c0_21] : memref<1x4xf32, #tpu.memory_space<vmem>>, vector<1x4xf32>
      tpu.vector_store %arg5[%c0_20, %c0_21], %20 {strides = array<i32>} : memref<1x4xf32, #tpu.memory_space<vmem>>, vector<1x4xf32>,
    } else {
    }
    %c0 = arith.constant 0 : index
    %c0_1 = arith.constant 0 : index
    %3 = vector.load %arg1[%c0, %c0_1] : memref<128x36xf32, #tpu.memory_space<vmem>>, vector<128x36xf32>
    %c0_2 = arith.constant 0 : index
    %c0_3 = arith.constant 0 : index
    %4 = vector.load %arg2[%c0_2, %c0_3] : memref<36x4xf32, #tpu.memory_space<vmem>>, vector<36x4xf32>
    %cst = arith.constant dense<0.000000e+00> : vector<128x4xf32>
    %5 = tpu.matmul %3, %4, %cst {dimension_numbers = #tpu.dot_dimension_numbers<[1], [0], [0], [1], [0, 0, 1, 1], [], []>, precision = #tpu.contract_precision<fp32>} : vector<128x36xf32>, vector<36x4xf32>, vector<128x4xf32> -> vector<128x4xf32>
    %c0_4 = arith.constant 0 : index
    %c0_5 = arith.constant 0 : index
    %6 = vector.load %arg3[%c0_4, %c0_5] : memref<128x4xf32, #tpu.memory_space<vmem>>, vector<128x4xf32>
    tpu.vector_store %arg3[%c0_4, %c0_5], %5 {strides = array<i32>} : memref<128x4xf32, #tpu.memory_space<vmem>>, vector<128x4xf32>,
    %c0_6 = arith.constant 0 : index
    %c0_7 = arith.constant 0 : index
    %7 = vector.load %arg4[%c0_6, %c0_7] : memref<1x4xf32, #tpu.memory_space<vmem>>, vector<1x4xf32>
    %cst_8 = arith.constant dense<0.000000e+00> : vector<4xf32>
    %8 = vector.multi_reduction <add>, %5, %cst_8 [0] : vector<128x4xf32> to vector<4xf32>
    %9 = vector.shape_cast %8 : vector<4xf32> to vector<1x4xf32>
    %10 = arith.addf %7, %9 : vector<1x4xf32>
    %c0_9 = arith.constant 0 : index
    %c0_10 = arith.constant 0 : index
    %11 = vector.load %arg4[%c0_9, %c0_10] : memref<1x4xf32, #tpu.memory_space<vmem>>, vector<1x4xf32>
    tpu.vector_store %arg4[%c0_9, %c0_10], %10 {strides = array<i32>} : memref<1x4xf32, #tpu.memory_space<vmem>>, vector<1x4xf32>,
    %c0_11 = arith.constant 0 : index
    %c0_12 = arith.constant 0 : index
    %12 = vector.load %arg5[%c0_11, %c0_12] : memref<1x4xf32, #tpu.memory_space<vmem>>, vector<1x4xf32>
    %13 = arith.mulf %5, %5 : vector<128x4xf32>
    %cst_13 = arith.constant dense<0.000000e+00> : vector<4xf32>
    %14 = vector.multi_reduction <add>, %13, %cst_13 [0] : vector<128x4xf32> to vector<4xf32>
    %15 = vector.shape_cast %14 : vector<4xf32> to vector<1x4xf32>
    %16 = arith.addf %12, %15 : vector<1x4xf32>
    %c0_14 = arith.constant 0 : index
    %c0_15 = arith.constant 0 : index
    %17 = vector.load %arg5[%c0_14, %c0_15] : memref<1x4xf32, #tpu.memory_space<vmem>>, vector<1x4xf32>
    tpu.vector_store %arg5[%c0_14, %c0_15], %16 {strides = array<i32>} : memref<1x4xf32, #tpu.memory_space<vmem>>, vector<1x4xf32>,
    return
  }
  func.func @transform_0(%arg0: i32) -> (i32, i32) {
    %c0_i32 = arith.constant 0 : i32
    %c0_i32_0 = arith.constant 0 : i32
    return %arg0, %c0_i32 : i32, i32
  }
  func.func @transform_1(%arg0: i32) -> (i32, i32) {
    %c0_i32 = arith.constant 0 : i32
    %c0_i32_0 = arith.constant 0 : i32
    %c0_i32_1 = arith.constant 0 : i32
    return %c0_i32, %c0_i32_0 : i32, i32
  }
  func.func @transform_2(%arg0: i32) -> (i32, i32) {
    %c0_i32 = arith.constant 0 : i32
    %c0_i32_0 = arith.constant 0 : i32
    return %arg0, %c0_i32 : i32, i32
  }
  func.func @transform_3(%arg0: i32) -> (i32, i32) {
    %c0_i32 = arith.constant 0 : i32
    %c0_i32_0 = arith.constant 0 : i32
    %c0_i32_1 = arith.constant 0 : i32
    return %c0_i32, %c0_i32_0 : i32, i32
  }
  func.func @transform_4(%arg0: i32) -> (i32, i32) {
    %c0_i32 = arith.constant 0 : i32
    %c0_i32_0 = arith.constant 0 : i32
    %c0_i32_1 = arith.constant 0 : i32
    return %c0_i32, %c0_i32_0 : i32, i32
  }
}

</mosaic_0001>

<bundles_post_ra>
// kernel: downsample_forward.3
= control target key start
LH: loop header
LB: loop body
LE: loop exit
PB: predicated region body
PF: predicated region fallthrough
CT: control target
= control target key end

     0   :  { %vm111_vm0 = vcmask 31744   ;;  %s303_s0 = inlined_call_operand.vmem [shape: f32[128,4], index: 0, kind: input, shape index: {}, may-alias: {0,2}]   ;;  %s304_s1 = inlined_call_operand.vmem [shape: f32[2,4], index: 1, kind: input, shape index: {}]   ;;  %s305_s2 = inlined_call_operand.vmem [shape: f32[128,4], index: 2, kind: output, shape index: {}, may-alias: {0,2}]  }
   0x1   :  { %v13_v0 = vld [vmem:[%s303_s0] sm:$0xff]  ;;  %v14_v3 = vld [vmem:[%s303_s0 + $0x8] sm:$0xff]  ;;  %v15_v4 = vld [vmem:[%s303_s0 + $0x10] sm:$0xff] }
   0x2   :  { %v155_v1 = vld [vmem:[%s304_s1] ss:$0 sm:$0xff]  ;;  %v160_v2 = vld [vmem:[%s304_s1 + $0x1] ss:$0 sm:$0xff]  ;;  %v16_v5 = vld [vmem:[%s303_s0 + $0x18] sm:$0xff] }
   0x3   :  { %v17_v6 = vld [vmem:[%s303_s0 + $0x20] sm:$0xff]  ;;  %v30_v7 = vmul.f32 %v155_v1, %v13_v0  ;;  %v31_v8 = vmul.f32 %v155_v1, %v14_v3  ;;  %v32_v9 = vmul.f32 %v155_v1, %v15_v4  ;;  %v33_v10 = vmul.f32 %v155_v1, %v16_v5  ;;  %v18_v11 = vld [vmem:[%s303_s0 + $0x28] sm:$0xff]  ;;  %v19_v12 = vld [vmem:[%s303_s0 + $0x30] sm:$0xff] }
   0x4   :  { %v20_v13 = vld [vmem:[%s303_s0 + $0x38] sm:$0xff]  ;;  %v34_v14 = vmul.f32 %v155_v1, %v17_v6  ;;  %v35_v15 = vmul.f32 %v155_v1, %v18_v11  ;;  %v36_v16 = vmul.f32 %v155_v1, %v19_v12  ;;  %v21_v33 = vld [vmem:[%s303_s0 + $0x40] sm:$0xff]  ;;  %v22_v34 = vld [vmem:[%s303_s0 + $0x48] sm:$0xff] }
   0x5   :  { %v37_v17 = vmul.f32 %v155_v1, %v20_v13  ;;  %v47_v18 = vadd.f32 %v160_v2, %v30_v7  ;;  %v48_v19 = vadd.f32 %v160_v2, %v31_v8  ;;  %v49_v20 = vadd.f32 %v160_v2, %v32_v9  ;;  %v23_v35 = vld [vmem:[%s303_s0 + $0x50] sm:$0xff] }
   0x6   :  { %v50_v21 = vadd.f32 %v160_v2, %v33_v10  ;;  %v51_v22 = vadd.f32 %v160_v2, %v34_v14  ;;  %v52_v23 = vadd.f32 %v160_v2, %v35_v15  ;;  %v53_v24 = vadd.f32 %v160_v2, %v36_v16 }
   0x7   :  { %v54_v25 = vadd.f32 %v160_v2, %v37_v17  ;;  %vm63_vm1 = vcmp.ge.f32.partialorder %v47_v18, 0.0  ;;  %v79_v26 = vmul.f32 0.01, %v47_v18  ;;  %vm64_vm2 = vcmp.ge.f32.partialorder %v48_v19, 0.0 }
   0x8   :  { %v80_v27 = vmul.f32 0.01, %v48_v19  ;;  %vm65_vm3 = vcmp.ge.f32.partialorder %v49_v20, 0.0  ;;  %v81_v28 = vmul.f32 0.01, %v49_v20  ;;  %vm66_vm4 = vcmp.ge.f32.partialorder %v50_v21, 0.0 }
   0x9   :  { %v82_v29 = vmul.f32 0.01, %v50_v21  ;;  %v95_v30 = vsel %vm63_vm1, %v47_v18, %v79_v26  ;;  %vm67_vm5 = vcmp.ge.f32.partialorder %v51_v22, 0.0  ;;  %v83_v32 = vmul.f32 0.01, %v51_v22 }
   0xa   :  { %v96_v31 = vsel %vm64_vm2, %v48_v19, %v80_v27  ;;  %112 = vst.msk [vmem:[%s305_s2] sm:$0xff] %vm111_vm0, %v95_v30  ;;  %v97_v36 = vsel %vm65_vm3, %v49_v20, %v81_v28  ;;  %vm68_vm6 = vcmp.ge.f32.partialorder %v52_v23, 0.0  ;;  %v84_v38 = vmul.f32 0.01, %v52_v23 }
   0xb   :  { %v98_v37 = vsel %vm66_vm4, %v50_v21, %v82_v29  ;;  %v99_v41 = vsel %vm67_vm5, %v51_v22, %v83_v32  ;;  %vm69_vm7 = vcmp.ge.f32.partialorder %v53_v24, 0.0  ;;  %v85_v42 = vmul.f32 0.01, %v53_v24 }
   0xc   :  { %vm70_vm8 = vcmp.ge.f32.partialorder %v54_v25, 0.0  ;;  %v100_v44 = vsel %vm68_vm6, %v52_v23, %v84_v38  ;;  %v86_v45 = vmul.f32 0.01, %v54_v25  ;;  %v38_v46 = vmul.f32 %v155_v1, %v21_v33 }
   0xd   :  { %v39_v47 = vmul.f32 %v155_v1, %v22_v34  ;;  %v101_v49 = vsel %vm69_vm7, %v53_v24, %v85_v42  ;;  %v40_v50 = vmul.f32 %v155_v1, %v23_v35 }
   0xe   :  { %v102_v53 = vsel %vm70_vm8, %v54_v25, %v86_v45  ;;  %v55_v54 = vadd.f32 %v160_v2, %v38_v46 }
   0xf   :  { %v56_v55 = vadd.f32 %v160_v2, %v39_v47  ;;  %v57_v57 = vadd.f32 %v160_v2, %v40_v50 }
  0x10   :  { %vm71_vm9 = vcmp.ge.f32.partialorder %v55_v54, 0.0  ;;  %v87_v61 = vmul.f32 0.01, %v55_v54 }
  0x11   :  { %v24_v39 = vld [vmem:[%s303_s0 + $0x58] sm:$0xff]  ;;  %v25_v40 = vld [vmem:[%s303_s0 + $0x60] sm:$0xff]  ;;  %vm72_vm10 = vcmp.ge.f32.partialorder %v56_v55, 0.0  ;;  %v88_v63 = vmul.f32 0.01, %v56_v55  ;;  %vm73_vm11 = vcmp.ge.f32.partialorder %v57_v57, 0.0 }
  0x12   :  { %113 = vst.msk [vmem:[%s305_s2 + $0x8] sm:$0xff] %vm111_vm0, %v96_v31  ;;  %v41_v51 = vmul.f32 %v155_v1, %v24_v39  ;;  %v42_v52 = vmul.f32 %v155_v1, %v25_v40  ;;  %v89_v0 = vmul.f32 0.01, %v57_v57  ;;  %v103_v4 = vsel %vm71_vm9, %v55_v54, %v87_v61 }
  0x13   :  { %v104_v7 = vsel %vm72_vm10, %v56_v55, %v88_v63 }
  0x14   :  { %v58_v58 = vadd.f32 %v160_v2, %v41_v51  ;;  %v59_v59 = vadd.f32 %v160_v2, %v42_v52  ;;  %v105_v8 = vsel %vm73_vm11, %v57_v57, %v89_v0 }
  0x16   :  { %vm74_vm12 = vcmp.ge.f32.partialorder %v58_v58, 0.0  ;;  %v90_v5 = vmul.f32 0.01, %v58_v58  ;;  %vm75_vm13 = vcmp.ge.f32.partialorder %v59_v59, 0.0  ;;  %v91_v9 = vmul.f32 0.01, %v59_v59 }
  0x18   :  { %v106_v10 = vsel %vm74_vm12, %v58_v58, %v90_v5  ;;  %v107_v13 = vsel %vm75_vm13, %v59_v59, %v91_v9 }
  0x19   :  { %v26_v43 = vld [vmem:[%s303_s0 + $0x68] sm:$0xff] }
  0x1a   :  { %114 = vst.msk [vmem:[%s305_s2 + $0x10] sm:$0xff] %vm111_vm0, %v97_v36  ;;  %v43_v56 = vmul.f32 %v155_v1, %v26_v43 }
  0x1c   :  { %v60_v62 = vadd.f32 %v160_v2, %v43_v56 }
  0x1e   :  { %vm76_vm14 = vcmp.ge.f32.partialorder %v60_v62, 0.0  ;;  %v92_v11 = vmul.f32 0.01, %v60_v62 }
  0x20   :  { %v108_v15 = vsel %vm76_vm14, %v60_v62, %v92_v11 }
  0x21   :  { %v27_v48 = vld [vmem:[%s303_s0 + $0x70] sm:$0xff] }
  0x22   :  { %115 = vst.msk [vmem:[%s305_s2 + $0x18] sm:$0xff] %vm111_vm0, %v98_v37  ;;  %v44_v60 = vmul.f32 %v155_v1, %v27_v48 }
  0x23   :  { %116 = vst.msk [vmem:[%s305_s2 + $0x20] sm:$0xff] %vm111_vm0, %v99_v41 }
  0x24   :  { %117 = vst.msk [vmem:[%s305_s2 + $0x28] sm:$0xff] %vm111_vm0, %v100_v44  ;;  %v61_v3 = vadd.f32 %v160_v2, %v44_v60 }
  0x25   :  { %118 = vst.msk [vmem:[%s305_s2 + $0x30] sm:$0xff] %vm111_vm0, %v101_v49 }
  0x26   :  { %119 = vst.msk [vmem:[%s305_s2 + $0x38] sm:$0xff] %vm111_vm0, %v102_v53  ;;  %vm77_vm15 = vcmp.ge.f32.partialorder %v61_v3, 0.0  ;;  %v93_v12 = vmul.f32 0.01, %v61_v3 }
  0x28   :  { %v109_v16 = vsel %vm77_vm15, %v61_v3, %v93_v12 }
  0x2d   :  { %v28_v6 = vld [vmem:[%s303_s0 + $0x78] sm:$0xff] }
  0x2e   :  { %120 = vst.msk [vmem:[%s305_s2 + $0x40] sm:$0xff] %vm111_vm0, %v103_v4  ;;  %v45_v14 = vmul.f32 %v155_v1, %v28_v6 }
  0x2f   :  { %121 = vst.msk [vmem:[%s305_s2 + $0x48] sm:$0xff] %vm111_vm0, %v104_v7 }
  0x30   :  { %122 = vst.msk [vmem:[%s305_s2 + $0x50] sm:$0xff] %vm111_vm0, %v105_v8  ;;  %v62_v17 = vadd.f32 %v160_v2, %v45_v14 }
  0x31   :  { %123 = vst.msk [vmem:[%s305_s2 + $0x58] sm:$0xff] %vm111_vm0, %v106_v10 }
  0x32   :  { %124 = vst.msk [vmem:[%s305_s2 + $0x60] sm:$0xff] %vm111_vm0, %v107_v13  ;;  %vm78_vm1 = vcmp.ge.f32.partialorder %v62_v17, 0.0  ;;  %v94_v1 = vmul.f32 0.01, %v62_v17 }
  0x33   :  { %125 = vst.msk [vmem:[%s305_s2 + $0x68] sm:$0xff] %vm111_vm0, %v108_v15 }
  0x34   :  { %126 = vst.msk [vmem:[%s305_s2 + $0x70] sm:$0xff] %vm111_vm0, %v109_v16  ;;  %v110_v18 = vsel %vm78_vm1, %v62_v17, %v94_v1 }
  0x35   :  { %127 = vst.msk [vmem:[%s305_s2 + $0x78] sm:$0xff] %vm111_vm0, %v110_v18 }

// kernel: downsample_forward.2
= control target key start
LH: loop header
LB: loop body
LE: loop exit
PB: predicated region body
PF: predicated region fallthrough
CT: control target
= control target key end

     0   :  { %vm91_vm0 = vcmask 1043456   ;;  %vm42_vm1 = vcmask 293888   ;;  %vm758_vm2 = vcmask 31744   ;;  %vm18_vm3 = vcmask 24576   ;;  %s1477_s1 = inlined_call_operand.vmem [shape: f32[36,4], index: 1, kind: input, shape index: {}]   ;;  %s1478_s0 = inlined_call_operand.vmem [shape: f32[128,36], index: 0, kind: input, shape index: {}]   ;;  %s1479_s2 = inlined_call_operand.vmem [shape: f32[128,4], index: 2, kind: output, shape index: {0}]   ;;  %s1480_s3 = inlined_call_operand.vmem [shape: f32[1,4], index: 3, kind: output, shape index: {1}]   ;;  %s1481_s4 = inlined_call_operand.vmem [shape: f32[1,4], index: 4, kind: output, shape index: {2}]  }
   0x1   :  { %v41_v0 = vld [vmem:[%s1477_s1 + $0x20] sm:$0xf]  ;;  %v40_v1 = vld [vmem:[%s1477_s1 + $0x18] sm:$0xff]  ;;  %v39_v2 = vld [vmem:[%s1477_s1 + $0x10] sm:$0xff] }
   0x2   :  { %v93_v3 = vsel %vm91_vm0, %v41_v0, 0  ;;  %v930_v4 = vand.u32 4294901760, %v40_v1  ;;  %v932_v5 = vand.u32 4294901760, %v39_v2  ;;  %v38_v6 = vld [vmem:[%s1477_s1 + $0x8] sm:$0xff]  ;;  %v37_v7 = vld [vmem:[%s1477_s1] sm:$0xff]  ;;  %v31_v36 = vld [vmem:[%s1478_s0 + $0x50] sm:$0xff] }
   0x3   :  { %v29_v8 = vld [vmem:[%s1478_s0 + $0x40] sm:$0xff]  ;;  %v943_v9 = vand.u32 4294901760, %v93_v3  ;;  %v945_v10 = vand.u32 4294901760, %v38_v6  ;;  %v947_v11 = vand.u32 4294901760, %v37_v7  ;;  %v30_v13 = vld [vmem:[%s1478_s0 + $0x48] sm:$0xff]  ;;  %v32_v44 = vld [vmem:[%s1478_s0 + $0x58] sm:$0xff] }
   0x4   :  { %v68_v12 = vsel %vm42_vm1, %v29_v8, 0  ;;  %v21_v14 = vld [vmem:[%s1478_s0] sm:$0xff]  ;;  %v959_v16 = vsub.f32 %v40_v1, %v930_v4  ;;  %v962_v17 = vsub.f32 %v39_v2, %v932_v5  ;;  %v71_v18 = vsel %vm42_vm1, %v30_v13, 0  ;;  %v22_v37 = vld [vmem:[%s1478_s0 + $0x8] sm:$0xff]  ;;  %v23_v45 = vld [vmem:[%s1478_s0 + $0x10] sm:$0xff] }
   0x5   :  { %v956_v15 = vand.u32 4294901760, %v68_v12  ;;  %884 = vmatpush.msra.mxu2 %v943_v9  ;;  %v257_v19 = vsub.f32 %v93_v3, %v943_v9  ;;  %v968_v20 = vsub.f32 %v38_v6, %v945_v10  ;;  %107 = vmatpush.msra.mxu0 %v943_v9  ;;  %v972_v21 = vsub.f32 %v37_v7, %v947_v11  ;;  %v24_v63 = vld [vmem:[%s1478_s0 + $0x18] sm:$0xff]  ;;  %v33_v8 = vld [vmem:[%s1478_s0 + $0x60] sm:$0xff] }
   0x6   :  { %v974_v22 = vand.u32 4294901760, %v71_v18  ;;  %v264_v24 = vand.u32 4294901760, %v959_v16  ;;  %v270_v25 = vand.u32 4294901760, %v962_v17  ;;  %v44_v26 = vsel %vm42_vm1, %v21_v14, 0 }
   0x7   :  { %v977_v23 = vsub.f32 %v68_v12, %v956_v15  ;;  %885 = vmatpush.msra.mxu2 %v930_v4  ;;  %v258_v27 = vand.u32 4294901760, %v257_v19  ;;  %v276_v28 = vand.u32 4294901760, %v968_v20  ;;  %109 = vmatpush.msra.mxu0 %v930_v4  ;;  %v992_v32 = vand.u32 4294901760, %v44_v26 }
   0x8   :  { %v985_v29 = vsub.f32 %v71_v18, %v974_v22  ;;  %v265_v31 = vsub.f32 %v959_v16, %v264_v24  ;;  %v271_v34 = vsub.f32 %v962_v17, %v270_v25  ;;  %v282_v35 = vand.u32 4294901760, %v972_v21 }
   0x9   :  { %v182_v30 = vand.u32 4294901760, %v977_v23  ;;  %886 = vmatpush.msra.mxu2 %v932_v5  ;;  %v259_v33 = vsub.f32 %v257_v19, %v258_v27  ;;  %111 = vmatpush.msra.mxu0 %v932_v5  ;;  %v1011_v40 = vsub.f32 %v44_v26, %v992_v32  ;;  %v277_v43 = vsub.f32 %v968_v20, %v276_v28 }
   0xa   :  { %v190_v39 = vand.u32 4294901760, %v985_v29  ;;  %v266_v42 = vand.u32 4294901760, %v265_v31  ;;  %v74_v48 = vsel %vm42_vm1, %v31_v36, 0  ;;  %v47_v49 = vsel %vm42_vm1, %v22_v37, 0 }
   0xb   :  { %v183_v38 = vsub.f32 %v977_v23, %v182_v30  ;;  %887 = vmatpush.msra.mxu2 %v945_v10  ;;  %v260_v41 = vand.u32 4294901760, %v259_v33  ;;  %113 = vmatpush.msra.mxu0 %v945_v10  ;;  %v118_v47 = vand.u32 4294901760, %v1011_v40  ;;  %v272_v50 = vand.u32 4294901760, %v271_v34 }
   0xc   :  { %v283_v51 = vsub.f32 %v972_v21, %v282_v35  ;;  %v1031_v52 = vand.u32 4294901760, %v74_v48  ;;  %v1033_v53 = vand.u32 4294901760, %v47_v49  ;;  %v191_v54 = vsub.f32 %v985_v29, %v190_v39 }
   0xd   :  { %v184_v46 = vand.u32 4294901760, %v183_v38  ;;  %888 = vmatpush.msra.mxu2 %v947_v11  ;;  %889 = vmatpush.msra.mxu3 %v260_v41  ;;  %v119_v55 = vsub.f32 %v1011_v40, %v118_v47  ;;  %v77_v56 = vsel %vm42_vm1, %v32_v44, 0  ;;  %v50_v57 = vsel %vm42_vm1, %v23_v45, 0 }
   0xe   :  { %261 = vmatpush.msra.mxu1 %v260_v41  ;;  %v278_v58 = vand.u32 4294901760, %v277_v43  ;;  %v1044_v59 = vsub.f32 %v74_v48, %v1031_v52  ;;  %v1047_v60 = vsub.f32 %v47_v49, %v1033_v53  ;;  %v1049_v61 = vand.u32 4294901760, %v50_v57  ;;  %115 = vmatpush.msra.mxu0 %v947_v11 }
   0xf   :  { %185 = vmatmul.f32.vlgmr.msra.gmra.mxu2 %v184_v46  ;;  %890 = vmatpush.msra.mxu3 %v266_v42  ;;  %v120_v62 = vand.u32 4294901760, %v119_v55  ;;  %v284_v0 = vand.u32 4294901760, %v283_v51  ;;  %v1056_v2 = vand.u32 4294901760, %v77_v56  ;;  %v192_v3 = vand.u32 4294901760, %v191_v54  ;;  %v27_v54 = vld [vmem:[%s1478_s0 + $0x30] sm:$0xff] }
  0x10   :  { %364 = vmatpush.msrb.mxu2 %v257_v19  ;;  %267 = vmatpush.msra.mxu1 %v266_v42  ;;  %v126_v1 = vand.u32 4294901760, %v1047_v60  ;;  %v198_v6 = vand.u32 4294901760, %v1044_v59  ;;  %v1060_v7 = vsub.f32 %v50_v57, %v1049_v61  ;;  %v53_v13 = vsel %vm42_vm1, %v24_v63, 0 }
  0x11   :  { %891 = vmatpush.msra.mxu3 %v272_v50  ;;  %590 = vmatpush.msrb.mxu0 %v258_v27  ;;  %v1073_v14 = vsub.f32 %v77_v56, %v1056_v2  ;;  %v80_v18 = vsel %vm42_vm1, %v33_v8, 0  ;;  %v62_v63 = vsel %vm42_vm1, %v27_v54, 0 }
  0x12   :  { %273 = vmatpush.msra.mxu1 %v272_v50  ;;  %121 = vmatmul.f32.vlgmr.msra.gmra.mxu0 %v120_v62  ;;  %v127_v12 = vsub.f32 %v1047_v60, %v126_v1  ;;  %v199_v19 = vsub.f32 %v1044_v59, %v198_v6  ;;  %v134_v27 = vand.u32 4294901760, %v1060_v7  ;;  %v1093_v31 = vand.u32 4294901760, %v80_v18 }
  0x13   :  { %892 = vmatpush.msra.mxu3 %v278_v58  ;;  %367 = vmatpush.msrb.mxu2 %v959_v16  ;;  %v1082_v16 = vand.u32 4294901760, %v53_v13  ;;  %v206_v34 = vand.u32 4294901760, %v1073_v14 }
  0x14   :  { %279 = vmatpush.msra.mxu1 %v278_v58  ;;  %594 = vmatpush.msrb.mxu0 %v264_v24  ;;  %v128_v26 = vand.u32 4294901760, %v127_v12  ;;  %v25_v24 = vld [vmem:[%s1478_s0 + $0x20] sm:$0xff]  ;;  %v200_v33 = vand.u32 4294901760, %v199_v19  ;;  %v135_v36 = vsub.f32 %v1060_v7, %v134_v27  ;;  %v1113_v37 = vsub.f32 %v80_v18, %v1093_v31 }
  0x15   :  { %893 = vmatpush.msra.mxu3 %v284_v0  ;;  %370 = vmatpush.msrb.mxu2 %v962_v17  ;;  %v1100_v17 = vsub.f32 %v53_v13, %v1082_v16  ;;  %v1183_v18 = vand.u32 4294901760, %v62_v63 }
  0x16   :  { %319 = vmatmul.f32.vlgmr.msra.gmra.mxu3 %v956_v15  ;;  %285 = vmatpush.msra.mxu1 %v284_v0  ;;  %v214_v42 = vand.u32 4294901760, %v1113_v37  ;;  %v36_v0 = vld [vmem:[%s1478_s0 + $0x78] sm:$0xff] }
  0x17   :  { %193 = vmatmul.f32.gmra.mxu2 %v192_v3  ;;  %470 = vmatpush.msrb.mxu3 %v943_v9  ;;  %v89_v19 = vsel %vm42_vm1, %v36_v0, 0 }
  0x18   :  { %287 = vmatmul.f32.vlgmr.msra.gmra.mxu1 %v992_v32  ;;  %598 = vmatpush.msrb.mxu0 %v270_v25  ;;  %v34_v25 = vld [vmem:[%s1478_s0 + $0x68] sm:$0xff]  ;;  %v215_v46 = vsub.f32 %v1113_v37, %v214_v42 }
  0x19   :  { %684 = vmatpush.msrb.mxu1 %v943_v9  ;;  %472 = vmatpush.msrb.mxu3 %v930_v4  ;;  %v56_v9 = vsel %vm42_vm1, %v25_v24, 0  ;;  %v83_v38 = vsel %vm42_vm1, %v34_v25, 0  ;;  %v1194_v25 = vand.u32 4294901760, %v89_v19 }
  0x1a   :  { %129 = vmatmul.f32.gmra.mxu0 %v128_v26  ;;  %373 = vmatpush.msrb.mxu2 %v968_v20  ;;  %v136_v20 = vand.u32 4294901760, %v135_v36  ;;  %v1123_v41 = vand.u32 4294901760, %v56_v9  ;;  %v1134_v43 = vand.u32 4294901760, %v83_v38  ;;  %v216_v56 = vand.u32 4294901760, %v215_v46  ;;  %v28_v26 = vld [vmem:[%s1478_s0 + $0x38] sm:$0xff] }
  0x1b   :  { %686 = vmatpush.msrb.mxu1 %v930_v4  ;;  %474 = vmatpush.msrb.mxu3 %v932_v5  ;;  %v207_v4 = vsub.f32 %v1073_v14, %v206_v34 }
  0x1c   :  { %602 = vmatpush.msrb.mxu0 %v276_v28  ;;  %376 = vmatpush.msrb.mxu2 %v972_v21  ;;  %v142_v28 = vand.u32 4294901760, %v1100_v17  ;;  %v1141_v45 = vsub.f32 %v56_v9, %v1123_v41  ;;  %v35_v21 = vld [vmem:[%s1478_s0 + $0x70] sm:$0xff]  ;;  %v165_v9 = vsub.f32 %v62_v63, %v1183_v18 }
  0x1d   :  { %688 = vmatpush.msrb.mxu1 %v932_v5  ;;  %476 = vmatpush.msrb.mxu3 %v945_v10  ;;  %v26_v5 = vld [vmem:[%s1478_s0 + $0x28] sm:$0xff]  ;;  %v208_v44 = vand.u32 4294901760, %v207_v4  ;;  %v86_v50 = vsel %vm42_vm1, %v35_v21, 0 }
  0x1e   :  { %323 = vmatmul.f32.gmra.mxu3 %v974_v22  ;;  %606 = vmatpush.msrb.mxu0 %v282_v35  ;;  %v59_v35 = vsel %vm42_vm1, %v26_v5, 0  ;;  %v150_v49 = vand.u32 4294901760, %v1141_v45  ;;  %v1162_v55 = vand.u32 4294901760, %v86_v50  ;;  %v1203_v5 = vsub.f32 %v89_v19, %v1194_v25 }
  0x1f   :  { %201 = vmatmul.f32.gmra.mxu2 %v200_v33  ;;  %690 = vmatpush.msrb.mxu1 %v945_v10  ;;  %v143_v10 = vsub.f32 %v1100_v17, %v142_v28  ;;  %v1156_v51 = vand.u32 4294901760, %v59_v35 }
  0x20   :  { %478 = vmatpush.msrb.mxu3 %v947_v11  ;;  %291 = vmatmul.f32.gmra.mxu1 %v1033_v53  ;;  %v151_v58 = vsub.f32 %v1141_v45, %v150_v49  ;;  %v1176_v3 = vsub.f32 %v86_v50, %v1162_v55 }
  0x21   :  { %692 = vmatpush.msrb.mxu1 %v947_v11  ;;  %v1151_v11 = vsub.f32 %v83_v38, %v1134_v43  ;;  %v144_v48 = vand.u32 4294901760, %v143_v10  ;;  %v1169_v62 = vsub.f32 %v59_v35, %v1156_v51  ;;  %v65_v38 = vsel %vm42_vm1, %v28_v26, 0 }
  0x22   :  { %137 = vmatmul.f32.gmra.mxu0 %v136_v20  ;;  %v152_v12 = vand.u32 4294901760, %v151_v58  ;;  %v230_v24 = vand.u32 4294901760, %v1176_v3  ;;  %v172_v10 = vand.u32 4294901760, %v65_v38  ;;  %v238_v35 = vand.u32 4294901760, %v1203_v5 }
  0x23   :  { %v222_v57 = vand.u32 4294901760, %v1151_v11  ;;  %v158_v13 = vand.u32 4294901760, %v1169_v62 }
  0x24   :  { %v231_v4 = vsub.f32 %v1176_v3, %v230_v24  ;;  %v239_v50 = vsub.f32 %v1203_v5, %v238_v35 }
  0x25   :  { %v223_v8 = vsub.f32 %v1151_v11, %v222_v57  ;;  %v159_v36 = vsub.f32 %v1169_v62, %v158_v13 }
  0x26   :  { %327 = vmatmul.f32.gmra.mxu3 %v1031_v52  ;;  %v232_v21 = vand.u32 4294901760, %v231_v4  ;;  %v240_v58 = vand.u32 4294901760, %v239_v50 }
  0x27   :  { %209 = vmatmul.f32.gmra.mxu2 %v208_v44  ;;  %v224_v33 = vand.u32 4294901760, %v223_v8  ;;  %v160_v20 = vand.u32 4294901760, %v159_v36  ;;  %v166_v44 = vand.u32 4294901760, %v165_v9 }
  0x28   :  { %295 = vmatmul.f32.gmra.mxu1 %v1049_v61 }
  0x29   :  { %v167_v46 = vsub.f32 %v165_v9, %v166_v44 }
  0x2a   :  { %145 = vmatmul.f32.gmra.mxu0 %v144_v48  ;;  %v173_v48 = vsub.f32 %v65_v38, %v172_v10 }
  0x2b   :  { %v168_v54 = vand.u32 4294901760, %v167_v46 }
  0x2e   :  { %331 = vmatmul.f32.gmra.mxu3 %v1056_v2 }
  0x2f   :  { %217 = vmatmul.f32.gmra.mxu2 %v216_v56  ;;  %v174_v56 = vand.u32 4294901760, %v173_v48 }
  0x30   :  { %299 = vmatmul.f32.gmra.mxu1 %v1082_v16 }
  0x31   :  { %v175_v63 = vsub.f32 %v173_v48, %v174_v56 }
  0x32   :  { %153 = vmatmul.f32.gmra.mxu0 %v152_v12 }
  0x33   :  { %v176_v0 = vand.u32 4294901760, %v175_v63 }
  0x36   :  { %335 = vmatmul.f32.gmra.mxu3 %v1093_v31 }
  0x37   :  { %225 = vmatmul.f32.gmra.mxu2 %v224_v33 }
  0x38   :  { %303 = vmatmul.f32.gmra.mxu1 %v1123_v41 }
  0x3a   :  { %161 = vmatmul.f32.gmra.mxu0 %v160_v20 }
  0x3e   :  { %339 = vmatmul.f32.gmra.mxu3 %v1134_v43 }
  0x3f   :  { %233 = vmatmul.f32.gmra.mxu2 %v232_v21 }
  0x40   :  { %307 = vmatmul.f32.gmra.mxu1 %v1156_v51 }
  0x42   :  { %169 = vmatmul.f32.gmra.mxu0 %v168_v54 }
  0x46   :  { %343 = vmatmul.f32.gmra.mxu3 %v1162_v55 }
  0x47   :  { %241 = vmatmul.f32.gmra.mxu2 %v240_v58 }
  0x48   :  { %311 = vmatmul.f32.gmra.mxu1 %v1183_v18 }
  0x4a   :  { %177 = vmatmul.f32.gmra.mxu0 %v176_v0 }
  0x4e   :  { %347 = vmatmul.f32.gmra.mxu3 %v1194_v25 }
  0x4f   :  { %379 = vmatmul.f32.vlgmr.msrb.gmra.mxu2 %v1011_v40 }
  0x50   :  { %315 = vmatmul.f32.gmra.mxu1 %v172_v10 }
  0x52   :  { %608 = vmatmul.f32.vlgmr.msrb.gmra.mxu0 %v992_v32 }
  0x56   :  { %482 = vmatmul.f32.vlgmr.msrb.gmra.mxu3 %v118_v47 }
  0x57   :  { %384 = vmatmul.f32.gmra.mxu2 %v1047_v60 }
  0x58   :  { %694 = vmatmul.f32.vlgmr.msrb.gmra.mxu1 %v992_v32 }
  0x5a   :  { %612 = vmatmul.f32.gmra.mxu0 %v1033_v53 }
  0x5e   :  { %488 = vmatmul.f32.gmra.mxu3 %v126_v1 }
  0x5f   :  { %389 = vmatmul.f32.gmra.mxu2 %v1060_v7 }
  0x60   :  { %698 = vmatmul.f32.gmra.mxu1 %v1033_v53 }
  0x62   :  { %616 = vmatmul.f32.gmra.mxu0 %v1049_v61 }
  0x66   :  { %494 = vmatmul.f32.gmra.mxu3 %v134_v27 }
  0x67   :  { %394 = vmatmul.f32.gmra.mxu2 %v1100_v17 }
  0x68   :  { %702 = vmatmul.f32.gmra.mxu1 %v1049_v61 }
  0x6a   :  { %620 = vmatmul.f32.gmra.mxu0 %v1082_v16 }
  0x6e   :  { %500 = vmatmul.f32.gmra.mxu3 %v142_v28 }
  0x6f   :  { %399 = vmatmul.f32.gmra.mxu2 %v1141_v45 }
  0x70   :  { %706 = vmatmul.f32.gmra.mxu1 %v1082_v16 }
  0x72   :  { %624 = vmatmul.f32.gmra.mxu0 %v1123_v41 }
  0x76   :  { %506 = vmatmul.f32.gmra.mxu3 %v150_v49 }
  0x77   :  { %404 = vmatmul.f32.gmra.mxu2 %v1169_v62 }
  0x78   :  { %710 = vmatmul.f32.gmra.mxu1 %v1123_v41 }
  0x7a   :  { %628 = vmatmul.f32.gmra.mxu0 %v1156_v51 }
  0x7e   :  { %512 = vmatmul.f32.gmra.mxu3 %v158_v13 }
  0x7f   :  { %409 = vmatmul.f32.gmra.mxu2 %v165_v9 }
  0x80   :  { %714 = vmatmul.f32.gmra.mxu1 %v1156_v51 }
  0x82   :  { %632 = vmatmul.f32.gmra.mxu0 %v1183_v18 }
  0x86   :  { %518 = vmatmul.f32.gmra.mxu3 %v166_v44 }
  0x87   :  { %414 = vmatmul.f32.gmra.mxu2 %v173_v48 }
  0x88   :  { %718 = vmatmul.f32.gmra.mxu1 %v1183_v18 }
  0x8a   :  { %636 = vmatmul.f32.gmra.mxu0 %v172_v10 }
  0x8e   :  { %524 = vmatmul.f32.gmra.mxu3 %v174_v56 }
  0x8f   :  { %419 = vmatmul.f32.gmra.mxu2 %v977_v23  ;;  %v1248_v32 = vpop.f32.mrf.mxu0 }
  0x90   :  { %722 = vmatmul.f32.gmra.mxu1 %v172_v10 }
  0x92   :  { %v186_v40 = vpop.f32.mrf.mxu2  ;;  %640 = vmatmul.f32.gmra.mxu0 %v956_v15 }
  0x95   :  { %v1251_v47 = vpop.f32.mrf.mxu1 }
  0x96   :  { %530 = vmatmul.f32.gmra.mxu3 %v182_v30 }
  0x97   :  { %424 = vmatmul.f32.gmra.mxu2 %v985_v29  ;;  %v1256_v53 = vpop.f32.mrf.mxu0 }
  0x98   :  { %726 = vmatmul.f32.gmra.mxu1 %v956_v15 }
  0x99   :  { %v320_v61 = vpop.f32.mrf.mxu3 }
  0x9a   :  { %v194_v60 = vpop.f32.mrf.mxu2  ;;  %v1259_v1 = vadd.f32 %v320_v61, %v186_v40  ;;  %644 = vmatmul.f32.gmra.mxu0 %v974_v22 }
  0x9d   :  { %v1262_v7 = vpop.f32.mrf.mxu1 }
  0x9e   :  { %536 = vmatmul.f32.gmra.mxu3 %v190_v39  ;;  %v293_v44 = vadd.f32 %v1262_v7, %v1256_v53 }
  0x9f   :  { %429 = vmatmul.f32.gmra.mxu2 %v1044_v59  ;;  %v1267_v27 = vpop.f32.mrf.mxu0 }
  0xa0   :  { %730 = vmatmul.f32.gmra.mxu1 %v974_v22 }
  0xa1   :  { %v324_v30 = vpop.f32.mrf.mxu3 }
  0xa2   :  { %v202_v23 = vpop.f32.mrf.mxu2  ;;  %v1270_v15 = vadd.f32 %v324_v30, %v194_v60  ;;  %648 = vmatmul.f32.gmra.mxu0 %v1031_v52 }
  0xa5   :  { %v1273_v16 = vpop.f32.mrf.mxu1 }
  0xa6   :  { %542 = vmatmul.f32.gmra.mxu3 %v198_v6  ;;  %v297_v56 = vadd.f32 %v1273_v16, %v1267_v27 }
  0xa7   :  { %434 = vmatmul.f32.gmra.mxu2 %v1073_v14  ;;  %v1278_v17 = vpop.f32.mrf.mxu0 }
  0xa8   :  { %734 = vmatmul.f32.gmra.mxu1 %v1031_v52 }
  0xa9   :  { %v328_v39 = vpop.f32.mrf.mxu3 }
  0xaa   :  { %v210_v29 = vpop.f32.mrf.mxu2  ;;  %v1281_v22 = vadd.f32 %v328_v39, %v202_v23  ;;  %652 = vmatmul.f32.gmra.mxu0 %v1056_v2 }
  0xad   :  { %v1284_v28 = vpop.f32.mrf.mxu1 }
  0xae   :  { %548 = vmatmul.f32.gmra.mxu3 %v206_v34 }
  0xaf   :  { %439 = vmatmul.f32.gmra.mxu2 %v1113_v37  ;;  %v1289_v41 = vpop.f32.mrf.mxu0 }
  0xb0   :  { %738 = vmatmul.f32.gmra.mxu1 %v1056_v2 }
  0xb1   :  { %v332_v6 = vpop.f32.mrf.mxu3 }
  0xb2   :  { %v218_v59 = vpop.f32.mrf.mxu2  ;;  %v1292_v52 = vadd.f32 %v332_v6, %v210_v29  ;;  %656 = vmatmul.f32.gmra.mxu0 %v1093_v31 }
  0xb5   :  { %v1295_v45 = vpop.f32.mrf.mxu1 }
  0xb6   :  { %554 = vmatmul.f32.gmra.mxu3 %v214_v42 }
  0xb7   :  { %444 = vmatmul.f32.gmra.mxu2 %v1151_v11  ;;  %v1300_v49 = vpop.f32.mrf.mxu0 }
  0xb8   :  { %742 = vmatmul.f32.gmra.mxu1 %v1093_v31 }
  0xb9   :  { %v336_v34 = vpop.f32.mrf.mxu3 }
  0xba   :  { %v226_v14 = vpop.f32.mrf.mxu2  ;;  %v1303_v2 = vadd.f32 %v336_v34, %v218_v59  ;;  %660 = vmatmul.f32.gmra.mxu0 %v1134_v43  ;;  %v301_v59 = vadd.f32 %v1284_v28, %v1278_v17  ;;  %v305_v28 = vadd.f32 %v1295_v45, %v1289_v41 }
  0xbd   :  { %v1306_v51 = vpop.f32.mrf.mxu1 }
  0xbe   :  { %560 = vmatmul.f32.gmra.mxu3 %v222_v57  ;;  %v309_v45 = vadd.f32 %v1306_v51, %v1300_v49 }
  0xbf   :  { %449 = vmatmul.f32.gmra.mxu2 %v1176_v3  ;;  %v1311_v62 = vpop.f32.mrf.mxu0 }
  0xc0   :  { %746 = vmatmul.f32.gmra.mxu1 %v1134_v43 }
  0xc1   :  { %v340_v42 = vpop.f32.mrf.mxu3 }
  0xc2   :  { %v234_v37 = vpop.f32.mrf.mxu2  ;;  %v1314_v31 = vadd.f32 %v340_v42, %v226_v14  ;;  %664 = vmatmul.f32.gmra.mxu0 %v1162_v55 }
  0xc5   :  { %v1317_v8 = vpop.f32.mrf.mxu1 }
  0xc6   :  { %566 = vmatmul.f32.gmra.mxu3 %v230_v24  ;;  %v313_v51 = vadd.f32 %v1317_v8, %v1311_v62 }
  0xc7   :  { %454 = vmatmul.f32.gmra.mxu2 %v1203_v5  ;;  %v1322_v12 = vpop.f32.mrf.mxu0 }
  0xc8   :  { %750 = vmatmul.f32.gmra.mxu1 %v1162_v55  ;;  %v289_v55 = vadd.f32 %v1251_v47, %v1248_v32 }
  0xc9   :  { %v344_v57 = vpop.f32.mrf.mxu3 }
  0xca   :  { %v242_v11 = vpop.f32.mrf.mxu2  ;;  %v1325_v43 = vadd.f32 %v344_v57, %v234_v37  ;;  %668 = vmatmul.f32.gmra.mxu0 %v1194_v25 }
  0xcd   :  { %v1328_v13 = vpop.f32.mrf.mxu1 }
  0xce   :  { %572 = vmatmul.f32.gmra.mxu3 %v238_v35 }
  0xcf   :  { %v609_v18 = vpop.f32.mrf.mxu0 }
  0xd0   :  { %754 = vmatmul.f32.gmra.mxu1 %v1194_v25 }
  0xd1   :  { %v348_v3 = vpop.f32.mrf.mxu3 }
  0xd2   :  { %v380_v19 = vpop.f32.mrf.mxu2  ;;  %v1333_v26 = vadd.f32 %v348_v3, %v242_v11 }
  0xd3   :  { %v381_v36 = vadd.f32 %v380_v19, %v289_v55 }
  0xd5   :  { %v695_v24 = vpop.f32.mrf.mxu1 }
  0xd7   :  { %v613_v33 = vpop.f32.mrf.mxu0 }
  0xd9   :  { %v483_v38 = vpop.f32.mrf.mxu3 }
  0xda   :  { %v385_v9 = vpop.f32.mrf.mxu2  ;;  %v484_v4 = vadd.f32 %v483_v38, %v381_v36 }
  0xdb   :  { %v386_v21 = vadd.f32 %v385_v9, %v293_v44 }
  0xdc   :  { %v610_v20 = vadd.f32 %v609_v18, %v484_v4 }
  0xdd   :  { %v699_v5 = vpop.f32.mrf.mxu1 }
  0xde   :  { %v696_v25 = vadd.f32 %v695_v24, %v610_v20 }
  0xdf   :  { %v617_v10 = vpop.f32.mrf.mxu0 }
  0xe0   :  { %759 = vst.msk [vmem:[%s1479_s2] sm:$0xff] %vm758_vm2, %v696_v25  ;;  %v817_v58 = vmul.f32 %v696_v25, %v696_v25  ;;  %v776_v32 = vsel %vm758_vm2, %v696_v25, 0.0 }
  0xe1   :  { %v489_v46 = vpop.f32.mrf.mxu3 }
  0xe2   :  { %v390_v35 = vpop.f32.mrf.mxu2  ;;  %v490_v48 = vadd.f32 %v489_v46, %v386_v21  ;;  %v833_v23 = vsel %vm758_vm2, %v817_v58, 0.0 }
  0xe3   :  { %v391_v40 = vadd.f32 %v390_v35, %v297_v56 }
  0xe4   :  { %v614_v50 = vadd.f32 %v613_v33, %v490_v48 }
  0xe5   :  { %v703_v54 = vpop.f32.mrf.mxu1 }
  0xe6   :  { %v700_v63 = vadd.f32 %v699_v5, %v614_v50 }
  0xe7   :  { %v621_v0 = vpop.f32.mrf.mxu0 }
  0xe8   :  { %760 = vst.msk [vmem:[%s1479_s2 + $0x8] sm:$0xff] %vm758_vm2, %v700_v63  ;;  %v777_v47 = vsel %vm758_vm2, %v700_v63, 0.0  ;;  %v818_v53 = vmul.f32 %v700_v63, %v700_v63 }
  0xe9   :  { %v778_v60 = vadd.f32 %v777_v47, %v776_v32  ;;  %v495_v7 = vpop.f32.mrf.mxu3 }
  0xea   :  { %v395_v61 = vpop.f32.mrf.mxu2  ;;  %v834_v27 = vsel %vm758_vm2, %v818_v53, 0.0  ;;  %v496_v30 = vadd.f32 %v495_v7, %v391_v40 }
  0xeb   :  { %v835_v16 = vadd.f32 %v834_v27, %v833_v23  ;;  %v396_v34 = vadd.f32 %v395_v61, %v301_v59 }
  0xec   :  { %v618_v29 = vadd.f32 %v617_v10, %v496_v30 }
  0xed   :  { %v707_v39 = vpop.f32.mrf.mxu1 }
  0xee   :  { %v704_v6 = vadd.f32 %v703_v54, %v618_v29 }
  0xef   :  { %v625_v14 = vpop.f32.mrf.mxu0 }
  0xf0   :  { %761 = vst.msk [vmem:[%s1479_s2 + $0x10] sm:$0xff] %vm758_vm2, %v704_v6  ;;  %v779_v37 = vsel %vm758_vm2, %v704_v6, 0.0  ;;  %v819_v42 = vmul.f32 %v704_v6, %v704_v6 }
  0xf1   :  { %v780_v11 = vadd.f32 %v779_v37, %v778_v60  ;;  %v501_v18 = vpop.f32.mrf.mxu3 }
  0xf2   :  { %v400_v57 = vpop.f32.mrf.mxu2  ;;  %v836_v3 = vsel %vm758_vm2, %v819_v42, 0.0  ;;  %v502_v19 = vadd.f32 %v501_v18, %v396_v34 }
  0xf3   :  { %v837_v24 = vadd.f32 %v836_v3, %v835_v16  ;;  %v401_v9 = vadd.f32 %v400_v57, %v305_v28 }
  0xf4   :  { %v622_v55 = vadd.f32 %v621_v0, %v502_v19 }
  0xf5   :  { %v711_v17 = vpop.f32.mrf.mxu1 }
  0xf6   :  { %v708_v33 = vadd.f32 %v707_v39, %v622_v55  ;;  %v317_v39 = vadd.f32 %v1328_v13, %v1322_v12 }
  0xf7   :  { %v629_v36 = vpop.f32.mrf.mxu0 }
  0xf8   :  { %762 = vst.msk [vmem:[%s1479_s2 + $0x18] sm:$0xff] %vm758_vm2, %v708_v33  ;;  %v781_v38 = vsel %vm758_vm2, %v708_v33, 0.0  ;;  %v820_v4 = vmul.f32 %v708_v33, %v708_v33 }
  0xf9   :  { %v782_v20 = vadd.f32 %v781_v38, %v780_v11  ;;  %v507_v44 = vpop.f32.mrf.mxu3 }
  0xfa   :  { %v405_v5 = vpop.f32.mrf.mxu2  ;;  %v838_v25 = vsel %vm758_vm2, %v820_v4, 0.0  ;;  %v508_v10 = vadd.f32 %v507_v44, %v401_v9 }
  0xfb   :  { %v839_v21 = vadd.f32 %v838_v25, %v837_v24  ;;  %v406_v50 = vadd.f32 %v405_v5, %v309_v45 }
  0xfc   :  { %v626_v35 = vadd.f32 %v625_v14, %v508_v10 }
  0xfd   :  { %v715_v41 = vpop.f32.mrf.mxu1 }
  0xfe   :  { %v712_v46 = vadd.f32 %v711_v17, %v626_v35 }
  0xff   :  { %v633_v48 = vpop.f32.mrf.mxu0 }
 0x100   :  { %763 = vst.msk [vmem:[%s1479_s2 + $0x20] sm:$0xff] %vm758_vm2, %v712_v46  ;;  %v783_v54 = vsel %vm758_vm2, %v712_v46, 0.0  ;;  %v821_v56 = vmul.f32 %v712_v46, %v712_v46 }
 0x101   :  { %v784_v58 = vadd.f32 %v783_v54, %v782_v20  ;;  %v513_v0 = vpop.f32.mrf.mxu3 }
 0x102   :  { %v410_v63 = vpop.f32.mrf.mxu2  ;;  %v840_v32 = vsel %vm758_vm2, %v821_v56, 0.0  ;;  %v514_v40 = vadd.f32 %v513_v0, %v406_v50 }
 0x103   :  { %v841_v47 = vadd.f32 %v840_v32, %v839_v21  ;;  %v411_v7 = vadd.f32 %v410_v63, %v313_v51 }
 0x104   :  { %v630_v53 = vadd.f32 %v629_v36, %v514_v40 }
 0x105   :  { %v719_v49 = vpop.f32.mrf.mxu1 }
 0x106   :  { %v716_v60 = vadd.f32 %v715_v41, %v630_v53 }
 0x107   :  { %v637_v61 = vpop.f32.mrf.mxu0 }
 0x108   :  { %764 = vst.msk [vmem:[%s1479_s2 + $0x28] sm:$0xff] %vm758_vm2, %v716_v60  ;;  %v822_v11 = vmul.f32 %v716_v60, %v716_v60  ;;  %v785_v3 = vsel %vm758_vm2, %v716_v60, 0.0 }
 0x109   :  { %v519_v27 = vpop.f32.mrf.mxu3  ;;  %v786_v36 = vadd.f32 %v785_v3, %v784_v58 }
 0x10a   :  { %v415_v23 = vpop.f32.mrf.mxu2  ;;  %v520_v30 = vadd.f32 %v519_v27, %v411_v7  ;;  %v842_v55 = vsel %vm758_vm2, %v822_v11, 0.0 }
 0x10b   :  { %v416_v14 = vadd.f32 %v415_v23, %v317_v39 }
 0x10c   :  { %v634_v16 = vadd.f32 %v633_v48, %v520_v30 }
 0x10d   :  { %v723_v29 = vpop.f32.mrf.mxu1 }
 0x10e   :  { %v720_v59 = vadd.f32 %v719_v49, %v634_v16 }
 0x10f   :  { %v641_v6 = vpop.f32.mrf.mxu0 }
 0x110   :  { %765 = vst.msk [vmem:[%s1479_s2 + $0x30] sm:$0xff] %vm758_vm2, %v720_v59  ;;  %v823_v19 = vmul.f32 %v720_v59, %v720_v59  ;;  %v787_v17 = vsel %vm758_vm2, %v720_v59, 0.0 }
 0x111   :  { %v525_v8 = vpop.f32.mrf.mxu3  ;;  %v788_v20 = vadd.f32 %v787_v17, %v786_v36 }
 0x112   :  { %v420_v62 = vpop.f32.mrf.mxu2  ;;  %v526_v34 = vadd.f32 %v525_v8, %v416_v14  ;;  %v844_v9 = vsel %vm758_vm2, %v823_v19, 0.0 }
 0x113   :  { %v421_v12 = vadd.f32 %v420_v62, %v1259_v1  ;;  %v843_v1 = vadd.f32 %v842_v55, %v841_v47 }
 0x114   :  { %v638_v37 = vadd.f32 %v637_v61, %v526_v34 }
 0x115   :  { %v727_v42 = vpop.f32.mrf.mxu1  ;;  %v845_v10 = vadd.f32 %v844_v9, %v843_v1 }
 0x116   :  { %v724_v57 = vadd.f32 %v723_v29, %v638_v37 }
 0x117   :  { %v645_v18 = vpop.f32.mrf.mxu0 }
 0x118   :  { %766 = vst.msk [vmem:[%s1479_s2 + $0x38] sm:$0xff] %vm758_vm2, %v724_v57  ;;  %v824_v28 = vmul.f32 %v724_v57, %v724_v57  ;;  %v789_v38 = vsel %vm758_vm2, %v724_v57, 0.0 }
 0x119   :  { %v531_v24 = vpop.f32.mrf.mxu3  ;;  %v790_v21 = vadd.f32 %v789_v38, %v788_v20 }
 0x11a   :  { %v425_v13 = vpop.f32.mrf.mxu2  ;;  %v532_v33 = vadd.f32 %v531_v24, %v421_v12  ;;  %v846_v44 = vsel %vm758_vm2, %v824_v28, 0.0 }
 0x11b   :  { %v426_v41 = vadd.f32 %v425_v13, %v1270_v15  ;;  %v847_v48 = vadd.f32 %v846_v44, %v845_v10 }
 0x11c   :  { %v642_v4 = vadd.f32 %v641_v6, %v532_v33 }
 0x11d   :  { %v731_v5 = vpop.f32.mrf.mxu1 }
 0x11e   :  { %v728_v25 = vadd.f32 %v727_v42, %v642_v4 }
 0x11f   :  { %v649_v35 = vpop.f32.mrf.mxu0 }
 0x120   :  { %767 = vst.msk [vmem:[%s1479_s2 + $0x40] sm:$0xff] %vm758_vm2, %v728_v25  ;;  %v791_v45 = vsel %vm758_vm2, %v728_v25, 0.0  ;;  %v825_v46 = vmul.f32 %v728_v25, %v728_v25 }
 0x121   :  { %v792_v50 = vadd.f32 %v791_v45, %v790_v21  ;;  %v537_v56 = vpop.f32.mrf.mxu3 }
 0x122   :  { %v430_v54 = vpop.f32.mrf.mxu2  ;;  %v848_v58 = vsel %vm758_vm2, %v825_v46, 0.0  ;;  %v538_v63 = vadd.f32 %v537_v56, %v426_v41 }
 0x123   :  { %v849_v0 = vadd.f32 %v848_v58, %v847_v48  ;;  %v431_v15 = vadd.f32 %v430_v54, %v1281_v22 }
 0x124   :  { %v646_v32 = vadd.f32 %v645_v18, %v538_v63 }
 0x125   :  { %v735_v40 = vpop.f32.mrf.mxu1 }
 0x126   :  { %v732_v47 = vadd.f32 %v731_v5, %v646_v32 }
 0x127   :  { %v653_v51 = vpop.f32.mrf.mxu0 }
 0x128   :  { %768 = vst.msk [vmem:[%s1479_s2 + $0x48] sm:$0xff] %vm758_vm2, %v732_v47  ;;  %v793_v53 = vsel %vm758_vm2, %v732_v47, 0.0  ;;  %v826_v49 = vmul.f32 %v732_v47, %v732_v47 }
 0x129   :  { %v794_v60 = vadd.f32 %v793_v53, %v792_v50  ;;  %v543_v7 = vpop.f32.mrf.mxu3 }
 0x12a   :  { %v435_v61 = vpop.f32.mrf.mxu2  ;;  %v850_v23 = vsel %vm758_vm2, %v826_v49, 0.0  ;;  %v544_v27 = vadd.f32 %v543_v7, %v431_v15 }
 0x12b   :  { %v851_v30 = vadd.f32 %v850_v23, %v849_v0  ;;  %v436_v22 = vadd.f32 %v435_v61, %v1292_v52  ;;  %v895_v52 = vmov 0.0  }
 0x12c   :  { %v650_v16 = vadd.f32 %v649_v35, %v544_v27  ;;  %19 = vst.msk [vmem:[%s1480_s3] sm:$0x1] %vm18_vm3, %v895_v52 }
 0x12d   :  { %v739_v29 = vpop.f32.mrf.mxu1  ;;  %20 = vst.msk [vmem:[%s1481_s4] sm:$0x1] %vm18_vm3, %v895_v52 }
 0x12e   :  { %v736_v39 = vadd.f32 %v735_v40, %v650_v16 }
 0x12f   :  { %v657_v11 = vpop.f32.mrf.mxu0 }
 0x130   :  { %769 = vst.msk [vmem:[%s1479_s2 + $0x50] sm:$0xff] %vm758_vm2, %v736_v39  ;;  %v795_v59 = vsel %vm758_vm2, %v736_v39, 0.0  ;;  %v827_v6 = vmul.f32 %v736_v39, %v736_v39 }
 0x131   :  { %v796_v14 = vadd.f32 %v795_v59, %v794_v60  ;;  %v549_v8 = vpop.f32.mrf.mxu3 }
 0x132   :  { %v440_v62 = vpop.f32.mrf.mxu2  ;;  %v852_v34 = vsel %vm758_vm2, %v827_v6, 0.0  ;;  %v550_v37 = vadd.f32 %v549_v8, %v436_v22 }
 0x133   :  { %v853_v42 = vadd.f32 %v852_v34, %v851_v30  ;;  %v441_v19 = vadd.f32 %v440_v62, %v1303_v2 }
 0x134   :  { %v654_v57 = vadd.f32 %v653_v51, %v550_v37 }
 0x135   :  { %v743_v18 = vpop.f32.mrf.mxu1 }
 0x136   :  { %v740_v3 = vadd.f32 %v739_v29, %v654_v57 }
 0x137   :  { %v661_v38 = vpop.f32.mrf.mxu0 }
 0x138   :  { %770 = vst.msk [vmem:[%s1479_s2 + $0x58] sm:$0xff] %vm758_vm2, %v740_v3  ;;  %v797_v12 = vsel %vm758_vm2, %v740_v3, 0.0  ;;  %v828_v13 = vmul.f32 %v740_v3, %v740_v3  ;;  %v775_v3 = vld [vmem:[%s1480_s3] sm:$0x1] }
 0x139   :  { %v798_v24 = vadd.f32 %v797_v12, %v796_v14  ;;  %v555_v17 = vpop.f32.mrf.mxu3 }
 0x13a   :  { %v445_v55 = vpop.f32.mrf.mxu2  ;;  %v854_v28 = vsel %vm758_vm2, %v828_v13, 0.0  ;;  %v556_v33 = vadd.f32 %v555_v17, %v441_v19  ;;  %v816_v13 = vld [vmem:[%s1481_s4] sm:$0x1] }
 0x13b   :  { %v855_v36 = vadd.f32 %v854_v28, %v853_v42  ;;  %v446_v2 = vadd.f32 %v445_v55, %v1314_v31 }
 0x13c   :  { %v658_v9 = vadd.f32 %v657_v11, %v556_v33 }
 0x13d   :  { %v747_v1 = vpop.f32.mrf.mxu1 }
 0x13e   :  { %v744_v4 = vadd.f32 %v743_v18, %v658_v9 }
 0x13f   :  { %v665_v48 = vpop.f32.mrf.mxu0 }
 0x140   :  { %771 = vst.msk [vmem:[%s1479_s2 + $0x60] sm:$0xff] %vm758_vm2, %v744_v4  ;;  %v799_v20 = vsel %vm758_vm2, %v744_v4, 0.0  ;;  %v829_v5 = vmul.f32 %v744_v4, %v744_v4 }
 0x141   :  { %v800_v44 = vadd.f32 %v799_v20, %v798_v24  ;;  %v561_v25 = vpop.f32.mrf.mxu3 }
 0x142   :  { %v856_v10 = vsel %vm758_vm2, %v829_v5, 0.0  ;;  %v562_v21 = vadd.f32 %v561_v25, %v446_v2  ;;  %v450_v41 = vpop.f32.mrf.mxu2 }
 0x143   :  { %v857_v35 = vadd.f32 %v856_v10, %v855_v36  ;;  %v451_v31 = vadd.f32 %v450_v41, %v1325_v43 }
 0x144   :  { %v662_v45 = vadd.f32 %v661_v38, %v562_v21 }
 0x145   :  { %v751_v63 = vpop.f32.mrf.mxu1 }
 0x146   :  { %v748_v46 = vadd.f32 %v747_v1, %v662_v45 }
 0x147   :  { %v669_v7 = vpop.f32.mrf.mxu0 }
 0x148   :  { %772 = vst.msk [vmem:[%s1479_s2 + $0x68] sm:$0xff] %vm758_vm2, %v748_v46  ;;  %v801_v50 = vsel %vm758_vm2, %v748_v46, 0.0  ;;  %v830_v54 = vmul.f32 %v748_v46, %v748_v46 }
 0x149   :  { %v802_v56 = vadd.f32 %v801_v50, %v800_v44  ;;  %v567_v58 = vpop.f32.mrf.mxu3 }
 0x14a   :  { %v858_v0 = vsel %vm758_vm2, %v830_v54, 0.0  ;;  %v568_v32 = vadd.f32 %v567_v58, %v451_v31  ;;  %v455_v15 = vpop.f32.mrf.mxu2 }
 0x14b   :  { %v859_v40 = vadd.f32 %v858_v0, %v857_v35  ;;  %v456_v43 = vadd.f32 %v455_v15, %v1333_v26 }
 0x14c   :  { %v666_v47 = vadd.f32 %v665_v48, %v568_v32 }
 0x14d   :  { %v755_v16 = vpop.f32.mrf.mxu1 }
 0x14e   :  { %v752_v53 = vadd.f32 %v751_v63, %v666_v47 }
 0x150   :  { %773 = vst.msk [vmem:[%s1479_s2 + $0x70] sm:$0xff] %vm758_vm2, %v752_v53  ;;  %v803_v49 = vsel %vm758_vm2, %v752_v53, 0.0  ;;  %v831_v51 = vmul.f32 %v752_v53, %v752_v53 }
 0x151   :  { %v804_v60 = vadd.f32 %v803_v49, %v802_v56  ;;  %v573_v61 = vpop.f32.mrf.mxu3 }
 0x152   :  { %v860_v23 = vsel %vm758_vm2, %v831_v51, 0.0  ;;  %v574_v27 = vadd.f32 %v573_v61, %v456_v43 }
 0x153   :  { %v861_v30 = vadd.f32 %v860_v23, %v859_v40 }
 0x154   :  { %v670_v29 = vadd.f32 %v669_v7, %v574_v27 }
 0x156   :  { %v756_v39 = vadd.f32 %v755_v16, %v670_v29 }
 0x158   :  { %774 = vst.msk [vmem:[%s1479_s2 + $0x78] sm:$0xff] %vm758_vm2, %v756_v39  ;;  %v805_v26 = vsel %vm758_vm2, %v756_v39, 0.0  ;;  %v832_v22 = vmul.f32 %v756_v39, %v756_v39 }
 0x159   :  { %v806_v59 = vadd.f32 %v805_v26, %v804_v60 }
 0x15a   :  { %v862_v6 = vsel %vm758_vm2, %v832_v22, 0.0 }
 0x15b   :  { %v807_v14 = vrot.slane %v806_v59, 4  ;;  %v863_v62 = vadd.f32 %v862_v6, %v861_v30 }
 0x15d   :  { %v808_v8 = vadd.f32 %v807_v14, %v806_v59  ;;  %v864_v34 = vrot.slane %v863_v62, 4 }
 0x15f   :  { %v809_v37 = vrot.slane %v808_v8, 2  ;;  %v865_v42 = vadd.f32 %v864_v34, %v863_v62 }
 0x161   :  { %v810_v11 = vadd.f32 %v809_v37, %v808_v8  ;;  %v866_v57 = vrot.slane %v865_v42, 2 }
 0x163   :  { %v811_v18 = vrot.slane %v810_v11, 1  ;;  %v867_v52 = vadd.f32 %v866_v57, %v865_v42 }
 0x165   :  { %v812_v19 = vadd.f32 %v811_v18, %v810_v11  ;;  %v868_v12 = vrot.slane %v867_v52, 1 }
 0x167   :  { %v813_v24 = vadd.f32 %v812_v19, %v775_v3  ;;  %v869_v55 = vadd.f32 %v868_v12, %v867_v52 }
 0x169   :  { %815 = vst.msk [vmem:[%s1480_s3] sm:$0x1] %vm18_vm3, %v813_v24  ;;  %v870_v17 = vadd.f32 %v869_v55, %v816_v13 }
 0x16b   :  { %871 = vst.msk [vmem:[%s1481_s4] sm:$0x1] %vm18_vm3, %v870_v17 }

</bundles_post_ra>
